<compile_context>
chip_gen: v5e
topology: v5e:2x2
jax: 0.10.0
libtpu: 0.0.40
codegen_flags: <defaults>
</compile_context>

<pallas_src>
import jax
import jax.numpy as jnp
from jax.experimental import pallas as pl
from jax.experimental.pallas import tpu as pltpu

_LANE = 128              # TPU lane width; padded hidden widths are multiples of this
_SINGLE_TILE_MAX = 512   # below this, one grid step (one batch tile)
_MAX_BATCH_TILE = 8192   # max rows per batch tile (intermediates ~12 MiB VMEM at f32)


def _round_up(n, m):
    return ((n + m - 1) // m) * m


def _cdiv(a, b):
    return -(-a // b)


def _mlp_kernel(x_ref, w1_ref, w2_ref, w3r_ref, b_ref, b3_ref, o_ref):
    """Fused fc1(+bn1)+relu -> fc2(+bn2)+relu -> fc3+relu (inference).

    BN is pre-folded into w1/b1 and w2/b2; dropout is identity at inference.
    The final layer is computed transposed so the batch dim lands on lanes and
    the output store is a slim, lane-dense (1, tb) row instead of (tb, 128).
    """
    x = x_ref[...]                                    # (tb, din)
    b = b_ref[...]                                    # (2, 128): [b1', b2'], 0 in pad lanes

    h1 = jnp.dot(x, w1_ref[...], preferred_element_type=jnp.float32) + b[0:1, :]
    h1 = jnp.maximum(h1, 0.0)
    # dropout(p=0.3) -> identity at inference

    h2 = jnp.dot(h1, w2_ref[...], preferred_element_type=jnp.float32) + b[1:2, :]
    h2 = jnp.maximum(h2, 0.0)
    # dropout(p=0.3) -> identity at inference

    # Final layer, batch-on-lanes: (1, 128) @ (128, tb) -> (1, tb).
    h2t = h2.T                                        # XLU transpose (slot otherwise idle)
    out = jnp.dot(w3r_ref[...], h2t, preferred_element_type=jnp.float32)
    out = jnp.maximum(out + b3_ref[0], 0.0)           # (1, tb), lane-dense
    o_ref[0] = out


def prepare_params(params, eps=1e-5):
    """One-time parameter prep (hoisted out of the forward path):
      * fold BatchNorm1d (running stats) into the Linear weights/biases,
      * transpose fc1/fc2 to (in, out) layout; keep fc3 as a (1, 128) row,
      * zero-pad hidden lane dims to 128 and pack b1'/b2' into one (2, 128) array,
      * keep fc3's bias as a single SMEM scalar.
    Zero padding is numerically inert: padded lanes get weight 0 + bias 0, so they
    stay exactly 0 through ReLU and contribute nothing downstream.
    """
    def fold(w, b, gamma, beta, mean, var):
        scale = gamma / jnp.sqrt(var + eps)            # (out,)
        return w * scale[:, None], (b - mean) * scale + beta

    w1, b1 = fold(params["w1"], params["b1"], params["bn1_gamma"],
                  params["bn1_beta"], params["bn1_mean"], params["bn1_var"])
    w2, b2 = fold(params["w2"], params["b2"], params["bn2_gamma"],
                  params["bn2_beta"], params["bn2_mean"], params["bn2_var"])
    w3, b3 = params["w3"], params["b3"]

    din = w1.shape[1]
    h1, h2, dout = w1.shape[0], w2.shape[0], w3.shape[0]   # 125, 25, 1
    assert dout == 1, "transposed final-layer store assumes a single output unit"
    h1p, h2p = _round_up(h1, _LANE), _round_up(h2, _LANE)
    assert h1p == h2p == _LANE

    def pad_wT(w, rows, cols):
        wt = w.T.astype(jnp.float32)                   # (in, out)
        return (jnp.zeros((rows, cols), jnp.float32)
                .at[:wt.shape[0], :wt.shape[1]].set(wt))

    w1p = pad_wT(w1, din, h1p)     # (din, 128): fc1 (+bn1 folded), (in, out)
    w2p = pad_wT(w2, h1p, h2p)     # (128, 128): fc2 (+bn2 folded), (in, out)
    # fc3 kept row-major (1, 128) so the last matmul runs against h2^T.
    w3r = jnp.zeros((1, h2p), jnp.float32).at[0, :h2].set(w3[0].astype(jnp.float32))

    bpack = jnp.zeros((2, h1p), jnp.float32)
    bpack = bpack.at[0, :h1].set(b1.astype(jnp.float32))
    bpack = bpack.at[1, :h2].set(b2.astype(jnp.float32))
    b3s = b3.astype(jnp.float32).reshape((1,))         # SMEM scalar

    return {"w1p": w1p, "w2p": w2p, "w3r": w3r, "bpack": bpack, "b3": b3s,
            "din": din, "dout": dout}


def _choose_tiles(B):
    """Pick (batch tile, padded batch). Tiles are multiples of 128 so the
    transpose / output store stay lane-dense; B > 512 always gets >= 2 tiles
    so both v7x TensorCores are fed; tiles are capped so f32 intermediates
    (two (tb,128) activations + transpose) stay well under scoped VMEM."""
    if B <= _SINGLE_TILE_MAX:
        tb = _round_up(max(B, 1), _LANE)
        return tb, tb
    n_tiles = max(2, _cdiv(B, _MAX_BATCH_TILE))
    tb = _round_up(_cdiv(B, n_tiles), _LANE)
    bp = _round_up(B, tb)
    return tb, bp


def regression_mlp_forward(x, prep):
    """x: (B, input_dim) float32. prep: output of prepare_params (called once)."""
    x = x.astype(jnp.float32)
    B = x.shape[0]
    din = prep["din"]
    w1p, w2p, w3r = prep["w1p"], prep["w2p"], prep["w3r"]
    bpack, b3 = prep["bpack"], prep["b3"]

    tb, bp = _choose_tiles(B)
    if bp != B:
        x = jnp.pad(x, ((0, bp - B), (0, 0)))
    n_tiles = bp // tb

    out = pl.pallas_call(
        _mlp_kernel,
        out_shape=jax.ShapeDtypeStruct((n_tiles, 1, tb), jnp.float32),
        grid=(n_tiles,),
        in_specs=[
            pl.BlockSpec((tb, din), lambda i: (i, 0)),              # x: tiled over batch
            pl.BlockSpec(w1p.shape, lambda i: (0, 0)),              # weights: resident
            pl.BlockSpec(w2p.shape, lambda i: (0, 0)),
            pl.BlockSpec(w3r.shape, lambda i: (0, 0)),
            pl.BlockSpec(bpack.shape, lambda i: (0, 0)),            # packed b1'/b2'
            pl.BlockSpec(memory_space=pltpu.MemorySpace.SMEM),      # fc3 bias scalar
        ],
        out_specs=pl.BlockSpec((1, 1, tb), lambda i: (i, 0, 0)),    # slim lane-dense store
        compiler_params=pltpu.CompilerParams(
            dimension_semantics=("parallel",),        # v7x: shard batch tiles over 2 TCs
            vmem_limit_bytes=48 * 1024 * 1024,        # safe headroom on v5e/v6e/v7x
        ),
    )(x, w1p, w2p, w3r, bpack, b3)

    # (n_tiles, 1, tb) -> (bp,) -> (B, 1); padded rows (relu(bias) garbage) sliced off.
    return out.reshape(bp)[:B].reshape(B, prep["dout"])


def reference_forward(x, params):
    """Pure-JAX reference of the same inference-mode forward pass."""
    eps = 1e-5

    def bn(h, gamma, beta, mean, var):
        return (h - mean) / jnp.sqrt(var + eps) * gamma + beta

    h = x @ params["w1"].T + params["b1"]
    h = jax.nn.relu(bn(h, params["bn1_gamma"], params["bn1_beta"],
                       params["bn1_mean"], params["bn1_var"]))
    h = h @ params["w2"].T + params["b2"]
    h = jax.nn.relu(bn(h, params["bn2_gamma"], params["bn2_beta"],
                       params["bn2_mean"], params["bn2_var"]))
    h = h @ params["w3"].T + params["b3"]
    return jax.nn.relu(h)


def init_params(key, input_dim):
    dims = [(125, input_dim), (25, 125), (1, 25)]
    keys = jax.random.split(key, 16)
    p = {}
    for i, (dout, din) in enumerate(dims, start=1):
        bound = 1.0 / jnp.sqrt(din)
        p[f"w{i}"] = jax.random.uniform(keys[2 * i], (dout, din),
                                        minval=-bound, maxval=bound,
                                        dtype=jnp.float32)
        p[f"b{i}"] = jax.random.uniform(keys[2 * i + 1], (dout,),
                                        minval=-bound, maxval=bound,
                                        dtype=jnp.float32)
    # BatchNorm params / running stats (deterministic, non-trivial values)
    p["bn1_gamma"] = 1.0 + 0.1 * jax.random.normal(keys[8], (125,), jnp.float32)
    p["bn1_beta"] = 0.1 * jax.random.normal(keys[9], (125,), jnp.float32)
    p["bn1_mean"] = 0.05 * jax.random.normal(keys[10], (125,), jnp.float32)
    p["bn1_var"] = jnp.abs(1.0 + 0.1 * jax.random.normal(keys[11], (125,), jnp.float32))
    p["bn2_gamma"] = 1.0 + 0.1 * jax.random.normal(keys[12], (25,), jnp.float32)
    p["bn2_beta"] = 0.1 * jax.random.normal(keys[13], (25,), jnp.float32)
    p["bn2_mean"] = 0.05 * jax.random.normal(keys[14], (25,), jnp.float32)
    p["bn2_var"] = jnp.abs(1.0 + 0.1 * jax.random.normal(keys[15], (25,), jnp.float32))
    return p


if __name__ == "__main__":
    key = jax.random.PRNGKey(0)
    kx, kp = jax.random.split(key)

    input_dim = 10   # stand-in for X.shape[1] from the CSV (not available here)
    batch = 8

    params = init_params(kp, input_dim)
    prep = prepare_params(params)   # one-time prep: BN fold, transpose, pad, bias pack

    # Small-batch path (single 128-row tile, single grid step).
    x = jax.random.normal(kx, (batch, input_dim), dtype=jnp.float32)
    out = jax.block_until_ready(regression_mlp_forward(x, prep))
    ref = reference_forward(x, params)
    assert out.shape == (batch, 1)
    assert jnp.allclose(out, ref, atol=1e-4, rtol=1e-4), "mismatch vs reference (B=8)"

    # Mid-batch path (grid=(2,), both v7x TensorCores fed, batch padding sliced off).
    xb = jax.random.normal(jax.random.PRNGKey(1), (600, input_dim), dtype=jnp.float32)
    outb = jax.block_until_ready(regression_mlp_forward(xb, prep))
    refb = reference_forward(xb, params)
    assert outb.shape == (600, 1)
    assert jnp.allclose(outb, refb, atol=1e-4, rtol=1e-4), "mismatch vs reference (B=600)"

    print("KERNEL_OK")
</pallas_src>

<mosaic_0001>
module attributes {stable_mosaic.version = 11 : i64} {
  func.func @_mlp_kernel(%arg0: i32, %arg1: memref<128x10xf32, #tpu.memory_space<vmem>>, %arg2: memref<10x128xf32, #tpu.memory_space<vmem>>, %arg3: memref<128x128xf32, #tpu.memory_space<vmem>>, %arg4: memref<1x128xf32, #tpu.memory_space<vmem>>, %arg5: memref<2x128xf32, #tpu.memory_space<vmem>>, %arg6: memref<1xf32, #tpu.memory_space<smem>>, %arg7: memref<1x1x128xf32, #tpu.memory_space<vmem>>) attributes {dimension_semantics = [#tpu.dimension_semantics<parallel>], iteration_bounds = array<i64: 1>, scalar_prefetch = 0 : i64, scratch_operands = 0 : i64, tpu.core_type = #tpu.core_type<tc>, window_params = [{transform_indices = @transform_0, window_bounds = array<i64: 128, 10>}, {pipeline_mode = #tpu.pipeline_mode<synchronous>, transform_indices = @transform_1, window_bounds = array<i64: 10, 128>}, {pipeline_mode = #tpu.pipeline_mode<synchronous>, transform_indices = @transform_2, window_bounds = array<i64: 128, 128>}, {pipeline_mode = #tpu.pipeline_mode<synchronous>, transform_indices = @transform_3, window_bounds = array<i64: 1, 128>}, {pipeline_mode = #tpu.pipeline_mode<synchronous>, transform_indices = @transform_4, window_bounds = array<i64: 2, 128>}, {transform_indices = @transform_5, window_bounds = array<i64: 1>}, {transform_indices = @transform_6, window_bounds = array<i64: 1, 1, 128>}]} {
    %c0 = arith.constant 0 : index
    %c0_0 = arith.constant 0 : index
    %0 = vector.load %arg1[%c0, %c0_0] : memref<128x10xf32, #tpu.memory_space<vmem>>, vector<128x10xf32>
    %c0_1 = arith.constant 0 : index
    %c0_2 = arith.constant 0 : index
    %1 = vector.load %arg5[%c0_1, %c0_2] : memref<2x128xf32, #tpu.memory_space<vmem>>, vector<2x128xf32>
    %c0_3 = arith.constant 0 : index
    %c0_4 = arith.constant 0 : index
    %2 = vector.load %arg2[%c0_3, %c0_4] : memref<10x128xf32, #tpu.memory_space<vmem>>, vector<10x128xf32>
    %cst = arith.constant dense<0.000000e+00> : vector<128x128xf32>
    %3 = tpu.matmul %0, %2, %cst {dimension_numbers = #tpu.dot_dimension_numbers<[1], [0], [0], [1], [0, 0, 1, 1], [], []>} : vector<128x10xf32>, vector<10x128xf32>, vector<128x128xf32> -> vector<128x128xf32>
    %4 = vector.extract_strided_slice %1 {offsets = [0, 0], sizes = [1, 128], strides = [1, 1]} : vector<2x128xf32> to vector<1x128xf32>
    %5 = vector.broadcast %4 : vector<1x128xf32> to vector<128x128xf32>
    %6 = arith.addf %3, %5 : vector<128x128xf32>
    %cst_5 = arith.constant 0.000000e+00 : f32
    %7 = vector.broadcast %cst_5 : f32 to vector<128x128xf32>
    %8 = arith.maximumf %6, %7 : vector<128x128xf32>
    %c0_6 = arith.constant 0 : index
    %c0_7 = arith.constant 0 : index
    %9 = vector.load %arg3[%c0_6, %c0_7] : memref<128x128xf32, #tpu.memory_space<vmem>>, vector<128x128xf32>
    %cst_8 = arith.constant dense<0.000000e+00> : vector<128x128xf32>
    %10 = tpu.matmul %8, %9, %cst_8 {dimension_numbers = #tpu.dot_dimension_numbers<[1], [0], [0], [1], [0, 0, 1, 1], [], []>} : vector<128x128xf32>, vector<128x128xf32>, vector<128x128xf32> -> vector<128x128xf32>
    %11 = vector.extract_strided_slice %1 {offsets = [1, 0], sizes = [1, 128], strides = [1, 1]} : vector<2x128xf32> to vector<1x128xf32>
    %12 = vector.broadcast %11 : vector<1x128xf32> to vector<128x128xf32>
    %13 = arith.addf %10, %12 : vector<128x128xf32>
    %cst_9 = arith.constant 0.000000e+00 : f32
    %14 = vector.broadcast %cst_9 : f32 to vector<128x128xf32>
    %15 = arith.maximumf %13, %14 : vector<128x128xf32>
    %16 = tpu.transpose %15, [1, 0] : vector<128x128xf32> -> vector<128x128xf32>
    %c0_10 = arith.constant 0 : index
    %c0_11 = arith.constant 0 : index
    %17 = vector.load %arg4[%c0_10, %c0_11] : memref<1x128xf32, #tpu.memory_space<vmem>>, vector<1x128xf32>
    %cst_12 = arith.constant dense<0.000000e+00> : vector<1x128xf32>
    %18 = tpu.matmul %17, %16, %cst_12 {dimension_numbers = #tpu.dot_dimension_numbers<[1], [0], [0], [1], [0, 0, 1, 1], [], []>} : vector<1x128xf32>, vector<128x128xf32>, vector<1x128xf32> -> vector<1x128xf32>
    %c0_13 = arith.constant 0 : index
    %19 = memref.load %arg6[%c0_13] : memref<1xf32, #tpu.memory_space<smem>>
    %20 = vector.broadcast %19 : f32 to vector<1x128xf32>
    %21 = arith.addf %18, %20 : vector<1x128xf32>
    %cst_14 = arith.constant 0.000000e+00 : f32
    %22 = vector.broadcast %cst_14 : f32 to vector<1x128xf32>
    %23 = arith.maximumf %21, %22 : vector<1x128xf32>
    %c0_15 = arith.constant 0 : index
    %c0_16 = arith.constant 0 : index
    %c0_17 = arith.constant 0 : index
    %24 = vector.load %arg7[%c0_15, %c0_16, %c0_17] : memref<1x1x128xf32, #tpu.memory_space<vmem>>, vector<1x1x128xf32>
    %25 = vector.shape_cast %24 : vector<1x1x128xf32> to vector<1x128xf32>
    %26 = vector.shape_cast %23 : vector<1x128xf32> to vector<1x1x128xf32>
    tpu.vector_store %arg7[%c0_15, %c0_16, %c0_17], %26 {strides = array<i32>} : memref<1x1x128xf32, #tpu.memory_space<vmem>>, vector<1x1x128xf32>,
    return
  }
  func.func @transform_0(%arg0: i32) -> (i32, i32) {
    %c0_i32 = arith.constant 0 : i32
    %c0_i32_0 = arith.constant 0 : i32
    return %arg0, %c0_i32 : i32, i32
  }
  func.func @transform_1(%arg0: i32) -> (i32, i32) {
    %c0_i32 = arith.constant 0 : i32
    %c0_i32_0 = arith.constant 0 : i32
    %c0_i32_1 = arith.constant 0 : i32
    return %c0_i32, %c0_i32_0 : i32, i32
  }
  func.func @transform_2(%arg0: i32) -> (i32, i32) {
    %c0_i32 = arith.constant 0 : i32
    %c0_i32_0 = arith.constant 0 : i32
    %c0_i32_1 = arith.constant 0 : i32
    return %c0_i32, %c0_i32_0 : i32, i32
  }
  func.func @transform_3(%arg0: i32) -> (i32, i32) {
    %c0_i32 = arith.constant 0 : i32
    %c0_i32_0 = arith.constant 0 : i32
    %c0_i32_1 = arith.constant 0 : i32
    return %c0_i32, %c0_i32_0 : i32, i32
  }
  func.func @transform_4(%arg0: i32) -> (i32, i32) {
    %c0_i32 = arith.constant 0 : i32
    %c0_i32_0 = arith.constant 0 : i32
    %c0_i32_1 = arith.constant 0 : i32
    return %c0_i32, %c0_i32_0 : i32, i32
  }
  func.func @transform_5(%arg0: i32) -> i32 {
    %c0_i32 = arith.constant 0 : i32
    %c0_i32_0 = arith.constant 0 : i32
    return %c0_i32 : i32
  }
  func.func @transform_6(%arg0: i32) -> (i32, i32, i32) {
    %c0_i32 = arith.constant 0 : i32
    %c0_i32_0 = arith.constant 0 : i32
    %c0_i32_1 = arith.constant 0 : i32
    return %arg0, %c0_i32, %c0_i32_0 : i32, i32, i32
  }
}

</mosaic_0001>

<bundles_post_ra>
// kernel: tpu_custom_call.1
= control target key start
LH: loop header
LB: loop body
LE: loop exit
PB: predicated region body
PF: predicated region fallthrough
CT: control target
= control target key end

     0   :  { %vm94_vm0 = vcmask 1041408   ;;  %vm45_vm1 = vcmask 80896   ;;  %s548_s0 = inlined_call_operand.vmem [shape: f32[128,10], index: 0, kind: input, shape index: {}]   ;;  %s549_s1 = inlined_call_operand.vmem [shape: f32[10,128], index: 1, kind: input, shape index: {}]   ;;  %s550_s2 = inlined_call_operand.vmem [shape: f32[128,128], index: 2, kind: input, shape index: {}]   ;;  %s551_s3 = inlined_call_operand.vmem [shape: f32[1,128], index: 3, kind: input, shape index: {}]   ;;  %s552_s4 = inlined_call_operand.vmem [shape: f32[2,128], index: 4, kind: input, shape index: {}]   ;;  %s553_s5 = inlined_call_operand.<no memory space> [shape: f32[1], index: 5, kind: input, shape index: {}]   ;;  %s554_s6 = inlined_call_operand.hbm [shape: f32[1,1,128], index: 6, kind: output, shape index: {}]  }
   0x1   :  { %v43_v0 = vld [vmem:[%s549_s1 + $0x8] sm:$0x3]  ;;  %v42_v1 = vld [vmem:[%s549_s1] sm:$0xff] }
   0x2   :  { %318 = vmatpush.msk.msra.mxu0 %vm94_vm0, %v43_v0  ;;  %v25_v2 = vld [vmem:[%s548_s0] sm:$0xff] }
   0x3   :  { %12 = vsyncpa [#allocation4], 0  ;;  %v26_v3 = vld [vmem:[%s548_s0 + $0x8] sm:$0xff]  ;;  %v27_v4 = vld [vmem:[%s548_s0 + $0x10] sm:$0xff]  ;;  %s378_s17 = smov [#allocation3]   ;;  %s309_s21 = sshll.u32 %s554_s6, 4  ;;  %s310_s21 = int_to_ptr.hbm [resolvable:$true] %s309_s21 }
   0x4   :  { %113 = vmatpush.msra.mxu0 %v42_v1  ;;  %v28_v5 = vld [vmem:[%s548_s0 + $0x18] sm:$0xff]  ;;  %v29_v6 = vld [vmem:[%s548_s0 + $0x20] sm:$0xff]  ;;  %v30_v7 = vld [vmem:[%s548_s0 + $0x28] sm:$0xff]  ;;  %s307_s18 = sshll.u32 %s378_s17, 4  ;;  %s308_s18 = int_to_ptr.vmem [resolvable:$true] %s307_s18 }
   0x5   :  { %319 = vmatmul.msk.f32.vlgmr.msra.gmra.mxu0 %vm45_vm1, %v25_v2  ;;  %v31_v8 = vld [vmem:[%s548_s0 + $0x30] sm:$0xff]  ;;  %v32_v9 = vld [vmem:[%s548_s0 + $0x38] sm:$0xff]  ;;  %v33_v10 = vld [vmem:[%s548_s0 + $0x40] sm:$0xff] }
   0x6   :  { %v194_v11 = vld [vmem:[%s550_s2 + $0x78] sm:$0xff]  ;;  %v193_v12 = vld [vmem:[%s550_s2 + $0x70] sm:$0xff]  ;;  %v192_v13 = vld [vmem:[%s550_s2 + $0x68] sm:$0xff] }
   0x7   :  { %196 = vmatpush.msra.mxu1 %v194_v11  ;;  %335 = vmatpush.msra.mxu3 %v194_v11  ;;  %v34_v14 = vld [vmem:[%s548_s0 + $0x48] sm:$0xff]  ;;  %v191_v15 = vld [vmem:[%s550_s2 + $0x60] sm:$0xff]  ;;  %v190_v16 = vld [vmem:[%s550_s2 + $0x58] sm:$0xff] }
   0x8   :  { %v189_v17 = vld [vmem:[%s550_s2 + $0x50] sm:$0xff]  ;;  %v188_v18 = vld [vmem:[%s550_s2 + $0x48] sm:$0xff]  ;;  %v187_v20 = vld [vmem:[%s550_s2 + $0x40] sm:$0xff] }
   0x9   :  { %197 = vmatpush.msra.mxu1 %v193_v12  ;;  %336 = vmatpush.msra.mxu3 %v193_v12  ;;  %v35_v19 = vld [vmem:[%s548_s0 + $0x50] sm:$0xff]  ;;  %v186_v21 = vld [vmem:[%s550_s2 + $0x38] sm:$0xff]  ;;  %v184_v23 = vld [vmem:[%s550_s2 + $0x28] sm:$0xff] }
   0xa   :  { %v185_v22 = vld [vmem:[%s550_s2 + $0x30] sm:$0xff]  ;;  %v36_v24 = vld [vmem:[%s548_s0 + $0x58] sm:$0xff]  ;;  %v183_v25 = vld [vmem:[%s550_s2 + $0x20] sm:$0xff] }
   0xb   :  { %198 = vmatpush.msra.mxu1 %v192_v13  ;;  %337 = vmatpush.msra.mxu3 %v192_v13  ;;  %v182_v26 = vld [vmem:[%s550_s2 + $0x18] sm:$0xff]  ;;  %v181_v27 = vld [vmem:[%s550_s2 + $0x10] sm:$0xff]  ;;  %v37_v28 = vld [vmem:[%s548_s0 + $0x60] sm:$0xff] }
   0xc   :  { %v180_v29 = vld [vmem:[%s550_s2 + $0x8] sm:$0xff]  ;;  %v179_v30 = vld [vmem:[%s550_s2] sm:$0xff]  ;;  %v39_v32 = vld [vmem:[%s548_s0 + $0x70] sm:$0xff] }
   0xd   :  { %320 = vmatmul.msk.f32.gmra.mxu0 %vm45_vm1, %v26_v3  ;;  %199 = vmatpush.msra.mxu1 %v191_v15  ;;  %v38_v31 = vld [vmem:[%s548_s0 + $0x68] sm:$0xff]  ;;  %v40_v33 = vld [vmem:[%s548_s0 + $0x78] sm:$0xff]  ;;  %v534_v34 = vld [vmem:[%s552_s4] sm:$0x3] }
   0xe   :  { %338 = vmatpush.msra.mxu3 %v191_v15  ;;  %v44_v35 = vperm.slane %v534_v34, 0 }
   0xf   :  { %200 = vmatpush.msra.mxu1 %v190_v16 }
  0x10   :  { %339 = vmatpush.msra.mxu3 %v190_v16 }
  0x11   :  { %201 = vmatpush.msra.mxu1 %v189_v17 }
  0x12   :  { %340 = vmatpush.msra.mxu3 %v189_v17 }
  0x13   :  { %202 = vmatpush.msra.mxu1 %v188_v18 }
  0x14   :  { %341 = vmatpush.msra.mxu3 %v188_v18 }
  0x15   :  { %321 = vmatmul.msk.f32.gmra.mxu0 %vm45_vm1, %v27_v4  ;;  %203 = vmatpush.msra.mxu1 %v187_v20 }
  0x16   :  { %342 = vmatpush.msra.mxu3 %v187_v20 }
  0x17   :  { %204 = vmatpush.msra.mxu1 %v186_v21 }
  0x18   :  { %343 = vmatpush.msra.mxu3 %v186_v21 }
  0x19   :  { %205 = vmatpush.msra.mxu1 %v185_v22 }
  0x1a   :  { %344 = vmatpush.msra.mxu3 %v185_v22 }
  0x1b   :  { %206 = vmatpush.msra.mxu1 %v184_v23 }
  0x1c   :  { %345 = vmatpush.msra.mxu3 %v184_v23 }
  0x1d   :  { %322 = vmatmul.msk.f32.gmra.mxu0 %vm45_vm1, %v28_v5  ;;  %207 = vmatpush.msra.mxu1 %v183_v25 }
  0x1e   :  { %346 = vmatpush.msra.mxu3 %v183_v25 }
  0x1f   :  { %208 = vmatpush.msra.mxu1 %v182_v26 }
  0x20   :  { %347 = vmatpush.msra.mxu3 %v182_v26 }
  0x21   :  { %209 = vmatpush.msra.mxu1 %v181_v27 }
  0x22   :  { %348 = vmatpush.msra.mxu3 %v181_v27 }
  0x23   :  { %210 = vmatpush.msra.mxu1 %v180_v29 }
  0x24   :  { %349 = vmatpush.msra.mxu3 %v180_v29 }
  0x25   :  { %323 = vmatmul.msk.f32.gmra.mxu0 %vm45_vm1, %v29_v6  ;;  %211 = vmatpush.msra.mxu1 %v179_v30 }
  0x26   :  { %350 = vmatpush.msra.mxu3 %v179_v30 }
  0x2d   :  { %324 = vmatmul.msk.f32.gmra.mxu0 %vm45_vm1, %v30_v7 }
  0x35   :  { %325 = vmatmul.msk.f32.gmra.mxu0 %vm45_vm1, %v31_v8 }
  0x3d   :  { %326 = vmatmul.msk.f32.gmra.mxu0 %vm45_vm1, %v32_v9 }
  0x45   :  { %327 = vmatmul.msk.f32.gmra.mxu0 %vm45_vm1, %v33_v10 }
  0x4d   :  { %328 = vmatmul.msk.f32.gmra.mxu0 %vm45_vm1, %v34_v14 }
  0x55   :  { %329 = vmatmul.msk.f32.gmra.mxu0 %vm45_vm1, %v35_v19 }
  0x5d   :  { %330 = vmatmul.msk.f32.gmra.mxu0 %vm45_vm1, %v36_v24 }
  0x65   :  { %331 = vmatmul.msk.f32.gmra.mxu0 %vm45_vm1, %v37_v28 }
  0x6d   :  { %332 = vmatmul.msk.f32.gmra.mxu0 %vm45_vm1, %v38_v31 }
  0x75   :  { %333 = vmatmul.msk.f32.gmra.mxu0 %vm45_vm1, %v39_v32  ;;  %v195_v32 = vperm.slane %v534_v34, 1 }
  0x7d   :  { %334 = vmatmul.msk.f32.gmra.mxu0 %vm45_vm1, %v40_v33 }
  0x82   :  { %v115_v36 = vpop.f32.mrf.mxu0 }
  0x83   :  { %v116_v37 = vadd.f32 %v115_v36, %v44_v35 }
  0x85   :  { %v163_v38 = vmax.f32 %v116_v37, 0.0 }
  0x87   :  { %212 = vmatmul.f32.vlgmr.msra.gmra.mxu1 %v163_v38 }
  0x8a   :  { %v118_v39 = vpop.f32.mrf.mxu0 }
  0x8b   :  { %v119_v40 = vadd.f32 %v118_v39, %v44_v35 }
  0x8d   :  { %v164_v41 = vmax.f32 %v119_v40, 0.0 }
  0x8f   :  { %215 = vmatmul.f32.gmra.mxu1 %v164_v41 }
  0x92   :  { %v121_v42 = vpop.f32.mrf.mxu0 }
  0x93   :  { %v122_v43 = vadd.f32 %v121_v42, %v44_v35 }
  0x95   :  { %v165_v44 = vmax.f32 %v122_v43, 0.0 }
  0x97   :  { %218 = vmatmul.f32.gmra.mxu1 %v165_v44 }
  0x9a   :  { %v124_v45 = vpop.f32.mrf.mxu0 }
  0x9b   :  { %v125_v46 = vadd.f32 %v124_v45, %v44_v35 }
  0x9d   :  { %v166_v47 = vmax.f32 %v125_v46, 0.0 }
  0x9f   :  { %221 = vmatmul.f32.gmra.mxu1 %v166_v47 }
  0xa2   :  { %v127_v48 = vpop.f32.mrf.mxu0 }
  0xa3   :  { %v128_v49 = vadd.f32 %v127_v48, %v44_v35 }
  0xa5   :  { %v167_v50 = vmax.f32 %v128_v49, 0.0 }
  0xa7   :  { %224 = vmatmul.f32.gmra.mxu1 %v167_v50 }
  0xaa   :  { %v130_v51 = vpop.f32.mrf.mxu0 }
  0xab   :  { %v131_v52 = vadd.f32 %v130_v51, %v44_v35 }
  0xad   :  { %v168_v53 = vmax.f32 %v131_v52, 0.0 }
  0xaf   :  { %227 = vmatmul.f32.gmra.mxu1 %v168_v53 }
  0xb2   :  { %v133_v54 = vpop.f32.mrf.mxu0 }
  0xb3   :  { %v134_v55 = vadd.f32 %v133_v54, %v44_v35 }
  0xb5   :  { %v169_v56 = vmax.f32 %v134_v55, 0.0 }
  0xb7   :  { %230 = vmatmul.f32.gmra.mxu1 %v169_v56 }
  0xba   :  { %v136_v57 = vpop.f32.mrf.mxu0 }
  0xbb   :  { %v137_v58 = vadd.f32 %v136_v57, %v44_v35 }
  0xbd   :  { %v170_v59 = vmax.f32 %v137_v58, 0.0 }
  0xbf   :  { %233 = vmatmul.f32.gmra.mxu1 %v170_v59 }
  0xc2   :  { %v139_v60 = vpop.f32.mrf.mxu0 }
  0xc3   :  { %v140_v61 = vadd.f32 %v139_v60, %v44_v35 }
  0xc5   :  { %v171_v62 = vmax.f32 %v140_v61, 0.0 }
  0xc7   :  { %236 = vmatmul.f32.gmra.mxu1 %v171_v62 }
  0xca   :  { %v142_v63 = vpop.f32.mrf.mxu0 }
  0xcb   :  { %v143_v0 = vadd.f32 %v142_v63, %v44_v35 }
  0xcd   :  { %v172_v1 = vmax.f32 %v143_v0, 0.0 }
  0xcf   :  { %239 = vmatmul.f32.vlgmr.msra.gmra.mxu3 %v172_v1 }
  0xd2   :  { %v145_v2 = vpop.f32.mrf.mxu0 }
  0xd3   :  { %v146_v3 = vadd.f32 %v145_v2, %v44_v35 }
  0xd5   :  { %v173_v4 = vmax.f32 %v146_v3, 0.0 }
  0xd7   :  { %242 = vmatmul.f32.gmra.mxu3 %v173_v4 }
  0xda   :  { %v148_v5 = vpop.f32.mrf.mxu0 }
  0xdb   :  { %v149_v6 = vadd.f32 %v148_v5, %v44_v35  ;;  %v277_v5 = vld [vmem:[%s551_s3] sm:$0x1] }
  0xdd   :  { %v174_v7 = vmax.f32 %v149_v6, 0.0  ;;  %v279_v6 = vstv %s553_s5 }
  0xdf   :  { %245 = vmatmul.f32.gmra.mxu3 %v174_v7 }
  0xe2   :  { %v151_v8 = vpop.f32.mrf.mxu0 }
  0xe3   :  { %v152_v9 = vadd.f32 %v151_v8, %v44_v35 }
  0xe5   :  { %v175_v10 = vmax.f32 %v152_v9, 0.0 }
  0xe7   :  { %248 = vmatmul.f32.gmra.mxu3 %v175_v10 }
  0xea   :  { %v154_v11 = vpop.f32.mrf.mxu0 }
  0xeb   :  { %v155_v12 = vadd.f32 %v154_v11, %v44_v35 }
  0xed   :  { %v176_v13 = vmax.f32 %v155_v12, 0.0 }
  0xef   :  { %251 = vmatmul.f32.gmra.mxu3 %v176_v13 }
  0xf2   :  { %v157_v14 = vpop.f32.mrf.mxu0 }
  0xf3   :  { %v158_v15 = vadd.f32 %v157_v14, %v44_v35 }
  0xf5   :  { %v177_v16 = vmax.f32 %v158_v15, 0.0 }
  0xf7   :  { %254 = vmatmul.f32.gmra.mxu3 %v177_v16 }
  0xfa   :  { %v160_v17 = vpop.f32.mrf.mxu0 }
  0xfb   :  { %v161_v18 = vadd.f32 %v160_v17, %v44_v35 }
  0xfd   :  { %v178_v19 = vmax.f32 %v161_v18, 0.0 }
  0xff   :  { %257 = vmatmul.f32.gmra.mxu3 %v178_v19 }
 0x104   :  { %v213_v20 = vpop.f32.mrf.mxu1 }
 0x105   :  { %v214_v2 = vadd.f32 %v213_v20, %v195_v32 }
 0x107   :  { %v261_v4 = vmax.f32 %v214_v2, 0.0 }
 0x10c   :  { %v216_v22 = vpop.f32.mrf.mxu1 }
 0x10d   :  { %v217_v0 = vadd.f32 %v216_v22, %v195_v32 }
 0x10f   :  { %v262_v3 = vmax.f32 %v217_v0, 0.0 }
 0x114   :  { %v219_v24 = vpop.f32.mrf.mxu1 }
 0x115   :  { %v220_v62 = vadd.f32 %v219_v24, %v195_v32 }
 0x117   :  { %v263_v1 = vmax.f32 %v220_v62, 0.0 }
 0x11c   :  { %v222_v26 = vpop.f32.mrf.mxu1 }
 0x11d   :  { %v223_v60 = vadd.f32 %v222_v26, %v195_v32 }
 0x11f   :  { %v264_v63 = vmax.f32 %v223_v60, 0.0 }
 0x124   :  { %v225_v28 = vpop.f32.mrf.mxu1 }
 0x125   :  { %v226_v58 = vadd.f32 %v225_v28, %v195_v32 }
 0x127   :  { %v265_v61 = vmax.f32 %v226_v58, 0.0 }
 0x12c   :  { %v228_v31 = vpop.f32.mrf.mxu1 }
 0x12d   :  { %v229_v56 = vadd.f32 %v228_v31, %v195_v32 }
 0x12f   :  { %v266_v59 = vmax.f32 %v229_v56, 0.0 }
 0x134   :  { %v231_v38 = vpop.f32.mrf.mxu1 }
 0x135   :  { %v232_v54 = vadd.f32 %v231_v38, %v195_v32 }
 0x137   :  { %v267_v57 = vmax.f32 %v232_v54, 0.0 }
 0x13c   :  { %v234_v43 = vpop.f32.mrf.mxu1 }
 0x13d   :  { %v235_v52 = vadd.f32 %v234_v43, %v195_v32 }
 0x13f   :  { %v268_v55 = vmax.f32 %v235_v52, 0.0 }
 0x144   :  { %v237_v49 = vpop.f32.mrf.mxu1 }
 0x145   :  { %v238_v50 = vadd.f32 %v237_v49, %v195_v32 }
 0x147   :  { %v269_v53 = vmax.f32 %v238_v50, 0.0 }
 0x152   :  { %v240_v21 = vpop.f32.mrf.mxu3 }
 0x153   :  { %v241_v34 = vadd.f32 %v240_v21, %v195_v32 }
 0x155   :  { %v270_v51 = vmax.f32 %v241_v34, 0.0 }
 0x15a   :  { %v243_v23 = vpop.f32.mrf.mxu3 }
 0x15b   :  { %v244_v46 = vadd.f32 %v243_v23, %v195_v32 }
 0x15d   :  { %v271_v48 = vmax.f32 %v244_v46, 0.0 }
 0x162   :  { %v246_v25 = vpop.f32.mrf.mxu3 }
 0x163   :  { %v247_v44 = vadd.f32 %v246_v25, %v195_v32 }
 0x165   :  { %v272_v47 = vmax.f32 %v247_v44, 0.0 }
 0x16a   :  { %v249_v27 = vpop.f32.mrf.mxu3 }
 0x16b   :  { %v250_v41 = vadd.f32 %v249_v27, %v195_v32 }
 0x16d   :  { %v273_v45 = vmax.f32 %v250_v41, 0.0 }
 0x172   :  { %v252_v29 = vpop.f32.mrf.mxu3 }
 0x173   :  { %v253_v39 = vadd.f32 %v252_v29, %v195_v32 }
 0x175   :  { %v274_v42 = vmax.f32 %v253_v39, 0.0 }
 0x17a   :  { %v255_v30 = vpop.f32.mrf.mxu3 }
 0x17b   :  { %v256_v37 = vadd.f32 %v255_v30, %v195_v32 }
 0x17d   :  { %v275_v40 = vmax.f32 %v256_v37, 0.0 }
 0x182   :  { %v258_v33 = vpop.f32.mrf.mxu3 }
 0x183   :  { %v259_v36 = vadd.f32 %v258_v33, %v195_v32 }
 0x185   :  { %v276_v35 = vmax.f32 %v259_v36, 0.0 }
 0x187   :  { %280 = vmatpush.xpose.msra.mxu2 %v276_v35 }
 0x18b   :  { %281 = vmatpush.xpose.msra.mxu2 %v275_v40 }
 0x18f   :  { %282 = vmatpush.xpose.msra.mxu2 %v274_v42 }
 0x193   :  { %283 = vmatpush.xpose.msra.mxu2 %v273_v45 }
 0x197   :  { %284 = vmatpush.xpose.msra.mxu2 %v272_v47 }
 0x19b   :  { %285 = vmatpush.xpose.msra.mxu2 %v271_v48 }
 0x19f   :  { %286 = vmatpush.xpose.msra.mxu2 %v270_v51 }
 0x1a3   :  { %287 = vmatpush.xpose.msra.mxu2 %v269_v53 }
 0x1a7   :  { %288 = vmatpush.xpose.msra.mxu2 %v268_v55 }
 0x1ab   :  { %289 = vmatpush.xpose.msra.mxu2 %v267_v57 }
 0x1af   :  { %290 = vmatpush.xpose.msra.mxu2 %v266_v59 }
 0x1b3   :  { %291 = vmatpush.xpose.msra.mxu2 %v265_v61 }
 0x1b7   :  { %292 = vmatpush.xpose.msra.mxu2 %v264_v63 }
 0x1bb   :  { %293 = vmatpush.xpose.msra.mxu2 %v263_v1 }
 0x1bf   :  { %294 = vmatpush.xpose.msra.mxu2 %v262_v3 }
 0x1c3   :  { %295 = vmatpush.xpose.msra.mxu2 %v261_v4 }
 0x1c6   :  { %296 = vmatmul.f32.vlgmr.msra.gmra.mxu2 %v277_v5 }
 0x249   :  { %v297_v7 = vpop.f32.mrf.mxu2 }
 0x24a   :  { %v298_v8 = vadd.f32 %v297_v7, %v279_v6 }
 0x24c   :  { %v300_v9 = vmax.f32 %v298_v8, 0.0 }
 0x24e   :  { %301 = vst [vmem:[#allocation3] sm:$0x1] %v300_v9 }
 0x24f   :  { %312 = dma.vmem_to_hbm [thread:$0]  %s308_s18, 16, %s310_s21, [#allocation4]  }
 0x250   :  { %376 = dma.done.wait [#allocation4], 16  }
 0x251   :  { %377 = vsyncadd [#allocation4], 4294967280 }
 0x252   :  { %317 = vsyncpa [#allocation4], 1 }

</bundles_post_ra>
